<compile_context>
chip_gen: v6e
topology: v6e:2x2x1
jax: 0.10.0
libtpu: 0.0.40
codegen_flags: <defaults>
</compile_context>

<pallas_src>
import functools

import jax
import jax.numpy as jnp
from jax import lax
from jax.experimental import pallas as pl
from jax.experimental.pallas import tpu as pltpu


def _mask_kernel(u_ref, m_ref, *, gamma, block_size):
    """{0,1} DropBlock keep-mask for a block of channels: 1 - maxpool(bernoulli(gamma))."""
    cb, H, W = u_ref.shape
    pad = block_size // 2

    # Bernoulli(gamma) sample, values {0, 1}; 0/1 is exact in bf16.
    bern = jnp.where(u_ref[...] < jnp.float32(gamma), 1.0, 0.0).astype(jnp.bfloat16)

    # Banded all-ones matrices built once as 2-D (shared across channels) instead of
    # channel-replicated: removes C x redundant iota/compare VPU work and C x VMEM.
    iw = lax.broadcasted_iota(jnp.int32, (W, W), 0)
    jw = lax.broadcasted_iota(jnp.int32, (W, W), 1)
    band_w = jnp.where(jnp.abs(iw - jw) <= pad, 1.0, 0.0).astype(jnp.bfloat16)   # (W, W)
    ih = lax.broadcasted_iota(jnp.int32, (H, H), 0)
    jh = lax.broadcasted_iota(jnp.int32, (H, H), 1)
    band_h = jnp.where(jnp.abs(ih - jh) <= pad, 1.0, 0.0).astype(jnp.bfloat16)   # (H, H)

    # max_pool2d(kernel=block_size, stride=1, padding=pad) on a {0,1} map is
    # "windowed sum > 0"; the separable windowed sum runs on the MXU.
    # W-direction: one tall (cb*H, W) x (W, W) matmul (fills the MXU M dimension
    # instead of many tiny batched matmuls).
    s_w = jnp.dot(bern.reshape(cb * H, W), band_w,
                  preferred_element_type=jnp.float32).reshape(cb, H, W)
    # H-direction: shared (H, H) band applied per channel.  Windowed sums are small
    # integers (<= block_size), so the bf16 cast is exact for any realistic block_size.
    s = jnp.einsum("chk,ckw->chw",
                   jnp.broadcast_to(band_h, (cb, H, H)), s_w.astype(jnp.bfloat16),
                   preferred_element_type=jnp.float32)

    # keep == 1 - max_pool(bern), exact; emitted directly in x.dtype ({0,1} is exact).
    m_ref[...] = jnp.where(s < 0.5, 1.0, 0.0).astype(m_ref.dtype)


def _apply_mask_kernel(scale_ref, x_ref, m_ref, y_ref):
    """y = x * mask * scale over lane-dense tiles (mask broadcast over rows)."""
    scale = scale_ref[0]                                   # f32 scalar from SMEM
    y_ref[...] = (x_ref[...] * (m_ref[...] * scale)).astype(y_ref.dtype)


_MIN_GRID_STEPS = 4   # guarantee enough grid steps for DMA/compute overlap


def _vmem_plan():
    """(pass-2 tile target bytes, scoped VMEM limit bytes), sized per TPU generation."""
    try:
        phys = int(pltpu.get_tpu_info().vmem_capacity_bytes)
    except Exception:
        phys = 128 << 20
    if phys >= (100 << 20):          # v5e / v6e class: 128 MiB physical VMEM
        return 8 << 20, 64 << 20     # 2x(in + out) double-buffered tiles ~= 32 MiB
    return 6 << 20, 40 << 20         # v7x class: 64 MiB physical VMEM -> ~24 MiB tiles


def _pick_tiles(n_rows, chw, itemsize, target_bytes):
    """(bn, bc) tile for the (n_rows, chw) elementwise pass.

    Tiles are lane-dense (128-lane multiples or full extent), sublane-aligned for the
    dtype (8 rows f32 / 16 bf16 / 32 int8-fp8), and split so the BlockSpec pipeline
    gets several grid steps to overlap DMA with compute.
    """
    sub = max(8, 32 // itemsize)                       # dtype-aware sublane alignment
    max_elems = max(sub * 128, target_bytes // itemsize)

    rows_per_block = max_elems // chw
    if rows_per_block >= n_rows:
        # Whole array fits in one target-size block: split anyway for pipelining.
        if n_rows >= _MIN_GRID_STEPS * sub:
            return max(sub, ((n_rows // _MIN_GRID_STEPS) // sub) * sub), chw
        if chw >= _MIN_GRID_STEPS * 128:
            return n_rows, max(128, ((chw // _MIN_GRID_STEPS) // 128) * 128)
        if chw >= 2 * 128:
            return n_rows, max(128, ((chw // 2) // 128) * 128)
        return n_rows, chw                             # too small to split with alignment
    if rows_per_block >= sub:
        return (rows_per_block // sub) * sub, chw      # aligned row tile, full rows
    # Rows are big relative to the budget: small aligned row group, tile the lane axis.
    bn = n_rows if n_rows < sub else sub
    bc = min(chw, max(128, (max_elems // bn) // 128 * 128))
    return bn, bc


def _pick_mask_channel_block(C, H, W, out_itemsize, budget_bytes=6 << 20):
    """Channels per pass-1 grid step so its VMEM footprint stays bounded (v7x-safe)."""
    # Rough per-channel bytes: f32 u (double-buffered) + bf16 bern + f32 s_w + bf16
    # copy + f32 s + broadcast band row + out block (double-buffered).
    per_ch = H * W * (2 * 4 + 2 + 4 + 2 + 4 + 2 * out_itemsize) + 2 * H * H
    return max(1, min(C, budget_bytes // max(per_ch, 1)))


def dropblock2d(x, seed, *, p=0.1, block_size=7, training=True):
    """JAX/Pallas equivalent of DropBlock2d.forward for NCHW inputs."""
    if not training or p == 0:
        return x
    # Even block_size makes torch's max_pool2d output mismatch the input shape; only odd works.
    assert block_size % 2 == 1, "block_size must be odd"
    N, C, H, W = x.shape

    # Gamma formula kept verbatim from the reference module (including its
    # `h * block_size + 1` denominator term).
    gamma = p * (H * W) / block_size ** 2 / ((W - block_size + 1) * (H * block_size + 1))

    # Randomness for torch.bernoulli, drawn outside the kernel; a single mask shared
    # across the batch (like torch's (1, C, H, W) mask).
    u = jax.random.uniform(jax.random.PRNGKey(seed), (C, H, W), dtype=jnp.float32)

    tile_target, vmem_limit = _vmem_plan()
    itemsize = jnp.dtype(x.dtype).itemsize

    # ---- Pass 1: {0,1} keep-mask in x.dtype, channel-tiled to bound VMEM. ----
    cb = _pick_mask_channel_block(C, H, W, itemsize)
    mask = pl.pallas_call(
        functools.partial(_mask_kernel, gamma=float(gamma), block_size=block_size),
        out_shape=jax.ShapeDtypeStruct((C, H, W), x.dtype),
        grid=(pl.cdiv(C, cb),),
        in_specs=[pl.BlockSpec((cb, H, W), lambda c: (c, 0, 0))],
        out_specs=pl.BlockSpec((cb, H, W), lambda c: (c, 0, 0)),
        compiler_params=pltpu.CompilerParams(
            dimension_semantics=("parallel",),
            vmem_limit_bytes=vmem_limit,
        ),
    )(u)

    # torch's `* mask.numel() / mask.sum()` as a single f32 scalar (inf/NaN when
    # everything is dropped, matching the torch reference).  This tiny reduce touches
    # only 1/N of the pass-2 bytes.
    scale = (jnp.float32(C * H * W) / jnp.sum(mask, dtype=jnp.float32)).reshape(1)

    # ---- Pass 2: lane-dense streaming multiply (HBM-roofline bound). ----
    chw = C * H * W
    x2 = x.reshape(N, chw)           # free layout plumbing outside the kernel
    m2 = mask.reshape(1, chw)

    bn, bc = _pick_tiles(N, chw, itemsize, tile_target)
    # Lane axis (j) is the OUTER grid dim so the shared mask block (0, j) stays
    # resident across all inner row blocks (no redundant mask DMA per step).
    grid = (pl.cdiv(chw, bc), pl.cdiv(N, bn))

    # If xprof ever shows exposed input DMA on v7x, sweep pipeline_mode=pl.Buffered(3)
    # on the x spec (VMEM budget has headroom with these tile sizes).
    y2 = pl.pallas_call(
        _apply_mask_kernel,
        out_shape=jax.ShapeDtypeStruct((N, chw), x.dtype),
        grid=grid,
        in_specs=[
            pl.BlockSpec(memory_space=pltpu.MemorySpace.SMEM),   # scale (resident scalar)
            pl.BlockSpec((bn, bc), lambda j, i: (i, j)),         # x tile
            pl.BlockSpec((1, bc), lambda j, i: (0, j)),          # mask tile (broadcast over rows)
        ],
        out_specs=pl.BlockSpec((bn, bc), lambda j, i: (i, j)),
        compiler_params=pltpu.CompilerParams(
            dimension_semantics=("parallel", "parallel"),        # megacore split on v7x
            vmem_limit_bytes=vmem_limit,
        ),
    )(scale, x2, m2)
    return y2.reshape(N, C, H, W)


def _dropblock_reference(x, u, *, p, block_size):
    """Pure-JAX reference (same uniforms) used as a correctness cross-check."""
    _, C, H, W = x.shape
    pad = block_size // 2
    gamma = p * (H * W) / block_size ** 2 / ((W - block_size + 1) * (H * block_size + 1))
    bern = (u < jnp.float32(gamma)).astype(jnp.float32)
    pooled = lax.reduce_window(bern, 0.0, lax.max,
                               window_dimensions=(1, block_size, block_size),
                               window_strides=(1, 1, 1),
                               padding=((0, 0), (pad, pad), (pad, pad)))
    mask = 1.0 - pooled
    return x * mask[None] * mask.size / jnp.sum(mask)


if __name__ == "__main__":
    key = jax.random.PRNGKey(0)
    x = jax.random.normal(key, (2, 4, 16, 16), dtype=jnp.float32)   # (N, C, H, W)

    seed = 0
    y = jax.block_until_ready(dropblock2d(x, seed=seed, p=0.1, block_size=7, training=True))
    assert y.shape == x.shape and y.dtype == x.dtype
    assert bool(jnp.all(jnp.isfinite(y)))

    # Cross-check against a pure-JAX reference using the same uniforms.
    _, C, H, W = x.shape
    u = jax.random.uniform(jax.random.PRNGKey(seed), (C, H, W), dtype=jnp.float32)
    y_ref = _dropblock_reference(x, u, p=0.1, block_size=7)
    assert bool(jnp.allclose(y, y_ref, rtol=1e-5, atol=1e-6))

    # Eval / p == 0 path returns the input unchanged.
    y_eval = jax.block_until_ready(dropblock2d(x, seed=seed, p=0.1, training=False))
    assert bool(jnp.all(y_eval == x))

    print("KERNEL_OK")
</pallas_src>

<mosaic_0001>
module attributes {stable_mosaic.version = 11 : i64} {
  func.func @_mask_kernel(%arg0: i32, %arg1: memref<4x16x16xf32, #tpu.memory_space<vmem>>, %arg2: memref<4x16x16xf32, #tpu.memory_space<vmem>>) attributes {dimension_semantics = [#tpu.dimension_semantics<parallel>], iteration_bounds = array<i64: 1>, scalar_prefetch = 0 : i64, scratch_operands = 0 : i64, tpu.core_type = #tpu.core_type<tc>, window_params = [{transform_indices = @transform_0, window_bounds = array<i64: 4, 16, 16>}, {transform_indices = @transform_1, window_bounds = array<i64: 4, 16, 16>}]} {
    %c0 = arith.constant 0 : index
    %c0_0 = arith.constant 0 : index
    %c0_1 = arith.constant 0 : index
    %0 = vector.load %arg1[%c0, %c0_0, %c0_1] : memref<4x16x16xf32, #tpu.memory_space<vmem>>, vector<4x16x16xf32>
    %cst = arith.constant 4.62344236E-4 : f32
    %1 = vector.broadcast %cst : f32 to vector<4x16x16xf32>
    %2 = arith.cmpf olt, %0, %1 : vector<4x16x16xf32>
    %cst_2 = arith.constant 1.000000e+00 : f32
    %cst_3 = arith.constant 0.000000e+00 : f32
    %3 = vector.broadcast %cst_2 : f32 to vector<4x16x16xf32>
    %4 = vector.broadcast %cst_3 : f32 to vector<4x16x16xf32>
    %5 = arith.select %2, %3, %4 : vector<4x16x16xi1>, vector<4x16x16xf32>
    %6 = arith.truncf %5 : vector<4x16x16xf32> to vector<4x16x16xbf16>
    %7 = tpu.iota {dimensions = array<i32: 0>} : vector<16x16xi32>
    %8 = tpu.iota {dimensions = array<i32: 1>} : vector<16x16xi32>
    %9 = arith.subi %7, %8 : vector<16x16xi32>
    %10 = math.absi %9 : vector<16x16xi32>
    %c3_i32 = arith.constant 3 : i32
    %11 = vector.broadcast %c3_i32 : i32 to vector<16x16xi32>
    %12 = arith.cmpi sle, %10, %11 : vector<16x16xi32>
    %cst_4 = arith.constant 1.000000e+00 : f32
    %cst_5 = arith.constant 0.000000e+00 : f32
    %13 = vector.broadcast %cst_4 : f32 to vector<16x16xf32>
    %14 = vector.broadcast %cst_5 : f32 to vector<16x16xf32>
    %15 = arith.select %12, %13, %14 : vector<16x16xi1>, vector<16x16xf32>
    %16 = arith.truncf %15 : vector<16x16xf32> to vector<16x16xbf16>
    %17 = tpu.iota {dimensions = array<i32: 0>} : vector<16x16xi32>
    %18 = tpu.iota {dimensions = array<i32: 1>} : vector<16x16xi32>
    %19 = arith.subi %17, %18 : vector<16x16xi32>
    %20 = math.absi %19 : vector<16x16xi32>
    %c3_i32_6 = arith.constant 3 : i32
    %21 = vector.broadcast %c3_i32_6 : i32 to vector<16x16xi32>
    %22 = arith.cmpi sle, %20, %21 : vector<16x16xi32>
    %cst_7 = arith.constant 1.000000e+00 : f32
    %cst_8 = arith.constant 0.000000e+00 : f32
    %23 = vector.broadcast %cst_7 : f32 to vector<16x16xf32>
    %24 = vector.broadcast %cst_8 : f32 to vector<16x16xf32>
    %25 = arith.select %22, %23, %24 : vector<16x16xi1>, vector<16x16xf32>
    %26 = arith.truncf %25 : vector<16x16xf32> to vector<16x16xbf16>
    %27 = vector.shape_cast %6 : vector<4x16x16xbf16> to vector<64x16xbf16>
    %cst_9 = arith.constant dense<0.000000e+00> : vector<64x16xf32>
    %28 = tpu.matmul %27, %16, %cst_9 {dimension_numbers = #tpu.dot_dimension_numbers<[1], [0], [0], [1], [0, 0, 1, 1], [], []>} : vector<64x16xbf16>, vector<16x16xbf16>, vector<64x16xf32> -> vector<64x16xf32>
    %29 = vector.shape_cast %28 : vector<64x16xf32> to vector<4x16x16xf32>
    %30 = vector.shape_cast %26 : vector<16x16xbf16> to vector<1x16x16xbf16>
    %31 = vector.broadcast %30 : vector<1x16x16xbf16> to vector<4x16x16xbf16>
    %32 = arith.truncf %29 : vector<4x16x16xf32> to vector<4x16x16xbf16>
    "tpu.trace_start"() <{level = 10 : i32, message = "chk,ckw->chw"}> : () -> ()
    %cst_10 = arith.constant dense<0.000000e+00> : vector<4x16x16xf32>
    %33 = tpu.matmul %31, %32, %cst_10 {dimension_numbers = #tpu.dot_dimension_numbers<[2], [1], [1], [2], [0, 0, 0, 1, 1, 2], [0], [0]>} : vector<4x16x16xbf16>, vector<4x16x16xbf16>, vector<4x16x16xf32> -> vector<4x16x16xf32>
    %cst_11 = arith.constant 5.000000e-01 : f32
    "tpu.trace_stop"() : () -> ()
    %34 = vector.broadcast %cst_11 : f32 to vector<4x16x16xf32>
    %35 = arith.cmpf olt, %33, %34 : vector<4x16x16xf32>
    %cst_12 = arith.constant 1.000000e+00 : f32
    %cst_13 = arith.constant 0.000000e+00 : f32
    %36 = vector.broadcast %cst_12 : f32 to vector<4x16x16xf32>
    %37 = vector.broadcast %cst_13 : f32 to vector<4x16x16xf32>
    %38 = arith.select %35, %36, %37 : vector<4x16x16xi1>, vector<4x16x16xf32>
    %c0_14 = arith.constant 0 : index
    %c0_15 = arith.constant 0 : index
    %c0_16 = arith.constant 0 : index
    %39 = vector.load %arg2[%c0_14, %c0_15, %c0_16] : memref<4x16x16xf32, #tpu.memory_space<vmem>>, vector<4x16x16xf32>
    tpu.vector_store %arg2[%c0_14, %c0_15, %c0_16], %38 {strides = array<i32>} : memref<4x16x16xf32, #tpu.memory_space<vmem>>, vector<4x16x16xf32>,
    return
  }
  func.func @transform_0(%arg0: i32) -> (i32, i32, i32) {
    %c0_i32 = arith.constant 0 : i32
    %c0_i32_0 = arith.constant 0 : i32
    %c0_i32_1 = arith.constant 0 : i32
    return %arg0, %c0_i32, %c0_i32_0 : i32, i32, i32
  }
  func.func @transform_1(%arg0: i32) -> (i32, i32, i32) {
    %c0_i32 = arith.constant 0 : i32
    %c0_i32_0 = arith.constant 0 : i32
    %c0_i32_1 = arith.constant 0 : i32
    return %arg0, %c0_i32, %c0_i32_0 : i32, i32, i32
  }
}

</mosaic_0001>

<bundles_post_ra>
// kernel: tpu_custom_call.1
= control target key start
LH: loop header
LB: loop body
LE: loop exit
PB: predicated region body
PF: predicated region fallthrough
CT: control target
= control target key end

     0   :  { %6 = vsyncpa [#allocation3], 0  ;;  %s545_s0 = inlined_call_operand.hbm [shape: f32[4,16,16], index: 0, kind: input, shape index: {}]   ;;  %s546_s1 = inlined_call_operand.hbm [shape: f32[4,16,16], index: 1, kind: output, shape index: {}]  }
   0x1   :  { %7 = vsyncpa [#allocation4], 0  ;;  %s470_s6 = smov [#allocation2]  }
   0x2   :  { %s13_s7 = sshll.u32 %s470_s6, 4  ;;  %s14_s7 = int_to_ptr.vmem [resolvable:$true] %s13_s7 }
   0x3   :  { %s434_s8 = scalar_lea.vmem %s14_s7, 1024  ;;  %p439_p1 = scmp.lt.s32.totalorder %s14_s7, %s14_s7 }
   0x4   :  { %p435_p0 = scmp.ne.s32.totalorder %s14_s7, %s434_s8  ;;  %p440_p2 = scmp.lt.s32.totalorder %s434_s8, %s434_s8 }
   0x6   :  { %p441_p3 = por %p440_p2, %p439_p1 }
   0x8   :  { %p442_p4 = pnand %p441_p3, %p435_p0 }
   0xa   :  { %445 = shalt.err (!%p442_p4)
}
   0xb   :  { %s471_s9 = smov 128   ;;  %s472_s10 = smov 8  }
   0xc   :  { %19 = dma.hbm_to_vmem [thread:$0]  %s545_s0, 1024, %s14_s7, [#allocation3], %s471_s9, %s471_s9, %s472_s10  }
   0xd   :  { %466 = dma.done.wait [#allocation3], 1024  }
   0xe   :  { %467 = vsyncadd [#allocation3], 4294966272  ;;  %v52_v0 = vlaneseq  ;;  %v473_v1 = vmov 0.0   ;;  %v24_v8 = vld [vmem:[#allocation2] sm:$0xff]  ;;  %v25_v9 = vld [vmem:[#allocation2 + $0x8] sm:$0xff]  ;;  %vm70_vm0 = vcmask 130048  }
   0xf   :  { %395 = vmatprep.subr.bf16.mxu1 %v473_v1  ;;  %v26_v10 = vld [vmem:[#allocation2 + $0x10] sm:$0xff]  ;;  %vm32_vm1 = vcmp.lt.f32.partialorder %v24_v8, 0.00046234424  ;;  %vm33_vm2 = vcmp.lt.f32.partialorder %v25_v9, 0.00046234424  ;;  %v27_v13 = vld [vmem:[#allocation2 + $0x18] sm:$0xff] }
  0x10   :  { %v53_v2 = vshrl.u32 %v52_v0, 7  ;;  %v56_v3 = vand.u32 127, %v52_v0  ;;  %v40_v14 = vsel %vm32_vm1, 1.0, %v473_v1  ;;  %v41_v15 = vsel %vm33_vm2, 1.0, %v473_v1  ;;  %v28_v19 = vld [vmem:[#allocation2 + $0x20] sm:$0xff]  ;;  %v29_v20 = vld [vmem:[#allocation2 + $0x28] sm:$0xff] }
  0x11   :  { %vm34_vm3 = vcmp.lt.f32.partialorder %v26_v10, 0.00046234424  ;;  %vm35_vm4 = vcmp.lt.f32.partialorder %v27_v13, 0.00046234424  ;;  %v48_v17 = vpack.c.bf16 %v41_v15, %v40_v14  ;;  %vm36_vm6 = vcmp.lt.f32.partialorder %v28_v19, 0.00046234424 }
  0x12   :  { %v54_v4 = vadd.s32 8, %v53_v2  ;;  %v57_v5 = vsub.s32 %v53_v2, %v56_v3  ;;  %v42_v18 = vsel %vm34_vm3, 1.0, %v473_v1  ;;  %v43_v22 = vsel %vm35_vm4, 1.0, %v473_v1  ;;  %v30_v26 = vld [vmem:[#allocation2 + $0x30] sm:$0xff]  ;;  %v31_v27 = vld [vmem:[#allocation2 + $0x38] sm:$0xff]  ;;  %s476_s0 = smov [#allocation5]  }
  0x13   :  { %vm37_vm7 = vcmp.lt.f32.partialorder %v29_v20, 0.00046234424  ;;  %387 = vmatprep.mubr.msk.bf16.mxu0 %vm70_vm0, %v48_v17  ;;  %v44_v23 = vsel %vm36_vm6, 1.0, %v473_v1  ;;  %v474_v29 = vmov 1.0|1.0   ;;  %v49_v30 = vpack.c.bf16 %v43_v22, %v42_v18  ;;  %s348_s13 = sshll.u32 %s476_s0, 4  ;;  %s349_s13 = int_to_ptr.vmem [resolvable:$true] %s348_s13 }
  0x14   :  { %v58_v6 = vsub.s32 %v54_v4, %v56_v3  ;;  %v60_v7 = vsub.s32 0, %v57_v5  ;;  %v45_v24 = vsel %vm37_vm7, 1.0, %v473_v1  ;;  %vm38_vm10 = vcmp.lt.f32.partialorder %v30_v26, 0.00046234424  ;;  %s446_s14 = scalar_lea.vmem %s349_s13, 1024  ;;  %p451_p6 = scmp.lt.s32.totalorder %s349_s13, %s349_s13 }
  0x15   :  { %v50_v31 = vpack.c.bf16 %v45_v24, %v44_v23  ;;  %vm39_vm11 = vcmp.lt.f32.partialorder %v31_v27, 0.00046234424  ;;  %v46_v32 = vsel %vm38_vm10, 1.0, %v473_v1  ;;  %vm475_vm12 = vmmov 0   ;;  %p447_p5 = scmp.ne.s32.totalorder %s349_s13, %s446_s14  ;;  %p452_p7 = scmp.lt.s32.totalorder %s446_s14, %s446_s14 }
  0x16   :  { %v360_v11 = vmin.u32 %v60_v7, %v57_v5  ;;  %v63_v12 = vsub.s32 0, %v58_v6  ;;  %v47_v33 = vsel %vm39_vm11, 1.0, %v473_v1  ;;  %397 = vmatprep.mubr.msk.bf16.mxu1 %vm475_vm12, %v473_v1 }
  0x17   :  { %v51_v34 = vpack.c.bf16 %v47_v33, %v46_v32  ;;  %p453_p8 = por %p452_p7, %p451_p6 }
  0x18   :  { %v361_v16 = vmin.u32 %v63_v12, %v58_v6  ;;  %vm65_vm5 = vcmp.le.s32.totalorder %v360_v11, 3 }
  0x19   :  { %v67_v21 = vsel %vm65_vm5, 1.0, %v473_v1  ;;  %p454_p9 = pnand %p453_p8, %p447_p5 }
  0x1a   :  { %vm66_vm8 = vcmp.le.s32.totalorder %v361_v16, 3 }
  0x1b   :  { %v68_v25 = vsel %vm66_vm8, 1.0, %v473_v1  ;;  %vm362_vm9 = vmpackc.low %vm66_vm8, %vm65_vm5 }
  0x1c   :  { %v69_v28 = vpack.c.bf16 %v68_v25, %v67_v21  ;;  %385 = vmatprep.subr.msk.bf16.mxu0 %vm362_vm9, %v474_v29 }
  0x1d   :  { %386 = vmatpush3.bf16.msk.msra.mxu0 %vm362_vm9, %v474_v29 }
  0x1e   :  { %407 = vmatprep.subr.bf16.mxu0 %v473_v1 }
  0x20   :  { %388 = vmatmul.mubr.msk.bf16.vlgmr.msra.gmra.mxu0 %vm70_vm0, %v49_v30 }
  0x21   :  { %391 = vmatprep.mubr.msk.bf16.mxu0 %vm70_vm0, %v50_v31 }
  0x28   :  { %392 = vmatmul.mubr.msk.bf16.gmra.mxu0 %vm70_vm0, %v51_v34 }
  0x29   :  { %409 = vmatprep.mubr.msk.bf16.mxu0 %vm475_vm12, %v473_v1 }
  0xe0   :  { %v389_v35 = vpop.f32.mrf.mxu0 }
  0xe2   :  { %v117_v36 = vpop.f32.mrf.mxu0 }
  0xe4   :  { %v390_v37 = vpop.f32.mrf.mxu0 }
  0xe5   :  { %v149_v42 = vpack.c.bf16 %v390_v37, %v389_v35 }
  0xe6   :  { %v120_v38 = vpop.f32.mrf.mxu0 }
  0xe7   :  { %v148_v39 = vpack.c.bf16 %v120_v38, %v117_v36 }
  0xe8   :  { %v393_v40 = vpop.f32.mrf.mxu0 }
  0xe9   :  { %396 = vmatpush3.bf16.msra.mxu1 %v148_v39 }
  0xea   :  { %v133_v41 = vpop.f32.mrf.mxu0  ;;  %401 = vmatprep.subr.bf16.mxu1 %v473_v1 }
  0xec   :  { %v394_v43 = vpop.f32.mrf.mxu0  ;;  %398 = vmatmul.mubr.msk.bf16.vlgmr.msra.gmra.mxu1 %vm70_vm0, %v69_v28 }
  0xed   :  { %402 = vmatpush3.bf16.msra.mxu1 %v149_v42  ;;  %403 = vmatprep.mubr.msk.bf16.mxu1 %vm475_vm12, %v473_v1  ;;  %v151_v46 = vpack.c.bf16 %v394_v43, %v393_v40 }
  0xee   :  { %v136_v44 = vpop.f32.mrf.mxu0  ;;  %413 = vmatprep.subr.bf16.mxu1 %v473_v1 }
  0xef   :  { %v150_v45 = vpack.c.bf16 %v136_v44, %v133_v41 }
  0xf1   :  { %408 = vmatpush3.bf16.msra.mxu0 %v150_v45 }
  0xf4   :  { %404 = vmatmul.mubr.msk.bf16.vlgmr.msra.gmra.mxu1 %vm70_vm0, %v69_v28  ;;  %410 = vmatmul.mubr.msk.bf16.vlgmr.msra.gmra.mxu0 %vm70_vm0, %v69_v28 }
  0xf5   :  { %414 = vmatpush3.bf16.msra.mxu1 %v151_v46  ;;  %415 = vmatprep.mubr.msk.bf16.mxu1 %vm475_vm12, %v473_v1 }
  0xfc   :  { %416 = vmatmul.mubr.msk.bf16.vlgmr.msra.gmra.mxu1 %vm70_vm0, %v69_v28 }
 0x1ac   :  { %v189_v47 = vpop.f32.mrf.mxu1 }
 0x1ad   :  { %vm319_vm13 = vcmp.lt.f32.partialorder %v189_v47, 0.5 }
 0x1ae   :  { %v327_v48 = vsel %vm319_vm13, 1.0, %v473_v1  ;;  %v399_v49 = vpop.f32.mrf.mxu1 }
 0x1af   :  { %335 = vst.msk [vmem:[#allocation5] sm:$0xff] %vm70_vm0, %v327_v48 }
 0x1b0   :  { %v192_v50 = vpop.f32.mrf.mxu1 }
 0x1b1   :  { %vm320_vm14 = vcmp.lt.f32.partialorder %v192_v50, 0.5 }
 0x1b2   :  { %v328_v51 = vsel %vm320_vm14, 1.0, %v473_v1  ;;  %v400_v52 = vpop.f32.mrf.mxu1 }
 0x1b3   :  { %336 = vst.msk [vmem:[#allocation5 + $0x8] sm:$0xff] %vm70_vm0, %v328_v51 }
 0x1b4   :  { %v230_v53 = vpop.f32.mrf.mxu1  ;;  %v271_v54 = vpop.f32.mrf.mxu0 }
 0x1b5   :  { %vm321_vm15 = vcmp.lt.f32.partialorder %v230_v53, 0.5  ;;  %vm323_vm1 = vcmp.lt.f32.partialorder %v271_v54, 0.5 }
 0x1b6   :  { %v329_v55 = vsel %vm321_vm15, 1.0, %v473_v1  ;;  %v405_v56 = vpop.f32.mrf.mxu1  ;;  %v331_v57 = vsel %vm323_vm1, 1.0, %v473_v1  ;;  %v411_v58 = vpop.f32.mrf.mxu0 }
 0x1b7   :  { %337 = vst.msk [vmem:[#allocation5 + $0x10] sm:$0xff] %vm70_vm0, %v329_v55  ;;  %339 = vst.msk [vmem:[#allocation5 + $0x20] sm:$0xff] %vm70_vm0, %v331_v57 }
 0x1b8   :  { %v233_v59 = vpop.f32.mrf.mxu1  ;;  %v274_v60 = vpop.f32.mrf.mxu0 }
 0x1b9   :  { %vm322_vm2 = vcmp.lt.f32.partialorder %v233_v59, 0.5  ;;  %vm324_vm3 = vcmp.lt.f32.partialorder %v274_v60, 0.5 }
 0x1ba   :  { %v330_v61 = vsel %vm322_vm2, 1.0, %v473_v1  ;;  %v406_v62 = vpop.f32.mrf.mxu1  ;;  %v332_v63 = vsel %vm324_vm3, 1.0, %v473_v1  ;;  %v412_v0 = vpop.f32.mrf.mxu0 }
 0x1bb   :  { %338 = vst.msk [vmem:[#allocation5 + $0x18] sm:$0xff] %vm70_vm0, %v330_v61  ;;  %340 = vst.msk [vmem:[#allocation5 + $0x28] sm:$0xff] %vm70_vm0, %v332_v63 }
 0x1bc   :  { %v312_v2 = vpop.f32.mrf.mxu1 }
 0x1bd   :  { %vm325_vm4 = vcmp.lt.f32.partialorder %v312_v2, 0.5 }
 0x1be   :  { %v333_v3 = vsel %vm325_vm4, 1.0, %v473_v1  ;;  %v417_v4 = vpop.f32.mrf.mxu1 }
 0x1bf   :  { %341 = vst.msk [vmem:[#allocation5 + $0x30] sm:$0xff] %vm70_vm0, %v333_v3 }
 0x1c0   :  { %v315_v5 = vpop.f32.mrf.mxu1 }
 0x1c1   :  { %vm326_vm5 = vcmp.lt.f32.partialorder %v315_v5, 0.5 }
 0x1c2   :  { %v334_v6 = vsel %vm326_vm5, 1.0, %v473_v1  ;;  %v418_v7 = vpop.f32.mrf.mxu1 }
 0x1c3   :  { %342 = vst.msk [vmem:[#allocation5 + $0x38] sm:$0xff] %vm70_vm0, %v334_v6 }
 0x1c4   :  { %457 = shalt.err (!%p454_p9)
}
 0x1c5   :  { %354 = dma.vmem_to_hbm [thread:$0]  %s349_s13, 1024, %s546_s1, [#allocation4], %s471_s9, %s471_s9, %s472_s10  }
 0x1c6   :  { %468 = dma.done.wait [#allocation4], 1024  }
 0x1c7   :  { %469 = vsyncadd [#allocation4], 4294966272 }
 0x1c8   :  { %358 = vsyncpa [#allocation3], 1 }
 0x1c9   :  { %359 = vsyncpa [#allocation4], 1 }

</bundles_post_ra>
